<compile_context>
chip_gen: v6e
topology: v6e:2x2x1
jax: 0.10.0
libtpu: 0.0.40
codegen_flags: <defaults>
</compile_context>

<pallas_src>
import functools
import math

import jax
import jax.numpy as jnp
from jax import lax
from jax.experimental import pallas as pl
from jax.experimental.pallas import tpu as pltpu


_ROW_TILES = (512, 256, 128, 64, 32, 16, 8)          # token-row tiles (sublanes)
_COL_TILES = (1024, 768, 512, 384, 256, 128)         # output-column tiles (lanes)
_Q_TILES = (256, 128)                                # attention q tiles
_KV_TILES = (512, 256, 128)                          # attention kv tiles


def _round_up(x, m):
    return (x + m - 1) // m * m


def _pick_col_tile(dim):
    """Largest column tile that divides dim; full dim if small; else the
    smallest candidate (caller pads the array up to a multiple of it)."""
    for c in _COL_TILES:
        if c <= dim and dim % c == 0:
            return c
    if dim <= _COL_TILES[-1]:
        return dim
    return _COL_TILES[-1]


def _pick_div_tile(dim, candidates):
    """Largest candidate dividing dim, else the full dim (always legal)."""
    for c in candidates:
        if c <= dim and dim % c == 0:
            return c
    return dim


def _compute_vmem_limit():
    try:
        cap = pltpu.get_tpu_info().vmem_capacity_bytes
        return int(min(96 * 1024 * 1024, cap * 0.7))   # ~45 MB on v7x, ~90 MB on v5e/v6e
    except Exception:
        return 32 * 1024 * 1024                        # conservative fallback


_VMEM_LIMIT = _compute_vmem_limit()


# ---------------- fused LayerNorm + matmul (+ bias, + optional GELU) ----------------

def _ln_matmul_kernel(x_ref, g_ref, b_ref, w_ref, *rest, activation, has_bias):
    if has_bias:
        bias_ref, o_ref = rest
    else:
        (o_ref,) = rest
    x = x_ref[...]                                        # (tm, K) f32 residual tile
    mean = jnp.mean(x, axis=-1, keepdims=True)
    xc = x - mean
    var = jnp.mean(xc * xc, axis=-1, keepdims=True)
    h = xc * lax.rsqrt(var + 1e-5)
    h = h * g_ref[...] + b_ref[...]                       # f32 LN
    y = jnp.dot(h.astype(jnp.bfloat16), w_ref[...],
                preferred_element_type=jnp.float32)       # MXU bf16 x bf16 -> f32
    if has_bias:
        y = y + bias_ref[...].astype(jnp.float32)
    if activation == "gelu":
        # exact (erf-based) GELU, matching torch.nn.GELU() default
        y = 0.5 * y * (1.0 + lax.erf(y * jnp.float32(1.0 / math.sqrt(2.0))))
    o_ref[...] = y.astype(o_ref.dtype)


def ln_linear(x2d, ln_w, ln_b, w_bf16, bias, activation="none",
              out_dtype=jnp.bfloat16):
    """out = act(LayerNorm(x) @ W + bias), LN fused in the matmul prologue."""
    M, K = x2d.shape
    Kw, N = w_bf16.shape
    assert K == Kw
    tm = _pick_div_tile(M, _ROW_TILES)
    tn = _pick_col_tile(N)
    Np = _round_up(N, tn)
    if Np != N:                                            # pad output columns (e.g. odd vocab)
        w_bf16 = jnp.pad(w_bf16, ((0, 0), (0, Np - N)))
        if bias is not None:
            bias = jnp.pad(bias, (0, Np - N))
    has_bias = bias is not None

    in_specs = [pl.BlockSpec((tm, K), lambda i, j: (i, 0)),
                pl.BlockSpec((1, K), lambda i, j: (0, 0)),
                pl.BlockSpec((1, K), lambda i, j: (0, 0)),
                pl.BlockSpec((K, tn), lambda i, j: (0, j))]
    operands = [x2d, ln_w.reshape(1, K), ln_b.reshape(1, K), w_bf16]
    if has_bias:
        in_specs.append(pl.BlockSpec((1, tn), lambda i, j: (0, j)))
        operands.append(bias.reshape(1, Np))

    kern = functools.partial(_ln_matmul_kernel, activation=activation,
                             has_bias=has_bias)
    out_bytes = M * Np * jnp.dtype(out_dtype).itemsize
    out = pl.pallas_call(
        kern,
        out_shape=jax.ShapeDtypeStruct((M, Np), out_dtype),
        grid=(M // tm, Np // tn),
        in_specs=in_specs,
        out_specs=pl.BlockSpec((tm, tn), lambda i, j: (i, j)),
        compiler_params=pltpu.CompilerParams(
            dimension_semantics=("parallel", "parallel"),
            vmem_limit_bytes=_VMEM_LIMIT),
        cost_estimate=pl.CostEstimate(
            flops=2 * M * Np * K,
            transcendentals=(M * Np if activation == "gelu" else 0),
            bytes_accessed=M * K * 4 + K * Np * 2 + out_bytes),
    )(*operands)
    return out[:, :N] if Np != N else out


# ---------------- matmul + bias + fused residual add (f32 residual stream) ----------------

def _matmul_residual_kernel(x_ref, w_ref, bias_ref, r_ref, o_ref):
    y = jnp.dot(x_ref[...], w_ref[...], preferred_element_type=jnp.float32)
    o_ref[...] = y + bias_ref[...].astype(jnp.float32) + r_ref[...]


def linear_residual(x2d_bf16, w_bf16, bias, residual_f32):
    """out = residual + x @ W + bias  (output is the new f32 residual)."""
    M, K = x2d_bf16.shape
    Kw, N = w_bf16.shape
    assert K == Kw
    tm = _pick_div_tile(M, _ROW_TILES)
    tn = _pick_col_tile(N)
    Np = _round_up(N, tn)
    if Np != N:
        w_bf16 = jnp.pad(w_bf16, ((0, 0), (0, Np - N)))
        bias = jnp.pad(bias, (0, Np - N))
        residual_f32 = jnp.pad(residual_f32, ((0, 0), (0, Np - N)))

    out = pl.pallas_call(
        _matmul_residual_kernel,
        out_shape=jax.ShapeDtypeStruct((M, Np), jnp.float32),
        grid=(M // tm, Np // tn),
        in_specs=[pl.BlockSpec((tm, K), lambda i, j: (i, 0)),
                  pl.BlockSpec((K, tn), lambda i, j: (0, j)),
                  pl.BlockSpec((1, tn), lambda i, j: (0, j)),
                  pl.BlockSpec((tm, tn), lambda i, j: (i, j))],
        out_specs=pl.BlockSpec((tm, tn), lambda i, j: (i, j)),
        compiler_params=pltpu.CompilerParams(
            dimension_semantics=("parallel", "parallel"),
            vmem_limit_bytes=_VMEM_LIMIT),
        cost_estimate=pl.CostEstimate(
            flops=2 * M * Np * K, transcendentals=0,
            bytes_accessed=M * K * 2 + K * Np * 2 + 2 * M * Np * 4),
    )(x2d_bf16, w_bf16, bias.reshape(1, Np), residual_f32)
    return out[:, :N] if Np != N else out


# ---------------- flash-style causal attention, grid (B, H, q_tiles, kv_tiles) ----------------

def _flash_attn_kernel(q_ref, k_ref, v_ref, o_ref, m_ref, l_ref, acc_ref,
                       *, scale, tq, tk):
    qi = pl.program_id(2)
    ki = pl.program_id(3)
    nk = pl.num_programs(3)

    @pl.when(ki == 0)
    def _():
        m_ref[...] = jnp.full_like(m_ref, -jnp.inf)
        l_ref[...] = jnp.zeros_like(l_ref)
        acc_ref[...] = jnp.zeros_like(acc_ref)

    q_start = qi * tq
    k_start = ki * tk

    # Skip kv tiles that lie entirely above the causal diagonal.
    @pl.when(k_start < q_start + tq)
    def _():
        # fold 1/sqrt(hd) into q (tq x hd) instead of scaling the (tq, tk) scores
        q = (q_ref[0, 0].astype(jnp.float32) * scale).astype(jnp.bfloat16)
        s = lax.dot_general(q, k_ref[0, 0], (((1,), (1,)), ((), ())),
                            preferred_element_type=jnp.float32)      # (tq, tk)
        row = q_start + lax.broadcasted_iota(jnp.int32, (tq, tk), 0)
        col = k_start + lax.broadcasted_iota(jnp.int32, (tq, tk), 1)
        s = jnp.where(row >= col, s, -jnp.inf)

        m_prev = m_ref[...]
        m_new = jnp.maximum(m_prev, jnp.max(s, axis=-1, keepdims=True))
        alpha = jnp.exp(m_prev - m_new)
        p = jnp.exp(s - m_new)
        l_ref[...] = alpha * l_ref[...] + jnp.sum(p, axis=-1, keepdims=True)
        acc_ref[...] = alpha * acc_ref[...] + jnp.dot(
            p.astype(jnp.bfloat16), v_ref[0, 0], preferred_element_type=jnp.float32)
        m_ref[...] = m_new

    @pl.when(ki == nk - 1)
    def _():
        o_ref[0, 0, :, :] = (acc_ref[...] / l_ref[...]).astype(o_ref.dtype)


def flash_attention(q, k, v):
    """q, k, v: (B, H, T, hd) bf16; returns (B, H, T, hd) bf16."""
    B, H, T, hd = q.shape
    tq = _pick_div_tile(T, _Q_TILES)
    tk = _pick_div_tile(T, _KV_TILES)
    scale = 1.0 / math.sqrt(hd)
    kern = functools.partial(_flash_attn_kernel, scale=scale, tq=tq, tk=tk)
    return pl.pallas_call(
        kern,
        out_shape=jax.ShapeDtypeStruct((B, H, T, hd), q.dtype),
        grid=(B, H, T // tq, T // tk),
        in_specs=[pl.BlockSpec((1, 1, tq, hd), lambda b, h, qi, ki: (b, h, qi, 0)),
                  pl.BlockSpec((1, 1, tk, hd), lambda b, h, qi, ki: (b, h, ki, 0)),
                  pl.BlockSpec((1, 1, tk, hd), lambda b, h, qi, ki: (b, h, ki, 0))],
        out_specs=pl.BlockSpec((1, 1, tq, hd), lambda b, h, qi, ki: (b, h, qi, 0)),
        scratch_shapes=[pltpu.VMEM((tq, 1), jnp.float32),   # running max
                        pltpu.VMEM((tq, 1), jnp.float32),   # running denom
                        pltpu.VMEM((tq, hd), jnp.float32)], # output accumulator
        compiler_params=pltpu.CompilerParams(
            dimension_semantics=("parallel", "parallel", "parallel", "arbitrary"),
            vmem_limit_bytes=_VMEM_LIMIT),
        cost_estimate=pl.CostEstimate(
            flops=2 * B * H * T * T * hd,                   # ~causal-halved 4*T*T*hd
            transcendentals=B * H * T * T // 2,
            bytes_accessed=4 * B * H * T * hd * 2),
    )(q, k, v)


# ---------------- parameter init (deterministic, synthetic, tied lm_head) ----------------

def init_params(key, cfg):
    V, D, L = cfg["vocab_size"], cfg["n_embd"], cfg["n_layer"]
    std = 0.02
    proj_std = 0.02 / math.sqrt(2 * L)
    keys = jax.random.split(key, 2 + 4 * L)
    params = {}
    wte = std * jax.random.normal(keys[0], (V, D), jnp.float32)
    params["wte"] = wte                                   # f32 for the embedding gather
    params["wte_t"] = wte.T.astype(jnp.bfloat16)          # tied lm_head weight (D, V), bf16
    params["wpe"] = std * jax.random.normal(keys[1], (cfg["block_size"], D), jnp.float32)
    blocks = []
    ki = 2
    for _ in range(L):
        blocks.append({
            "ln1_w": jnp.ones((D,), jnp.float32),
            "ln1_b": jnp.zeros((D,), jnp.float32),
            "ln2_w": jnp.ones((D,), jnp.float32),
            "ln2_b": jnp.zeros((D,), jnp.float32),
            "w_qkv": (std * jax.random.normal(keys[ki + 0], (D, 3 * D), jnp.float32)).astype(jnp.bfloat16),
            "b_qkv": jnp.zeros((3 * D,), jnp.float32),
            "w_proj": (proj_std * jax.random.normal(keys[ki + 1], (D, D), jnp.float32)).astype(jnp.bfloat16),
            "b_proj": jnp.zeros((D,), jnp.float32),
            "w_fc": (std * jax.random.normal(keys[ki + 2], (D, 4 * D), jnp.float32)).astype(jnp.bfloat16),
            "b_fc": jnp.zeros((4 * D,), jnp.float32),
            "w_mproj": (proj_std * jax.random.normal(keys[ki + 3], (4 * D, D), jnp.float32)).astype(jnp.bfloat16),
            "b_mproj": jnp.zeros((D,), jnp.float32),
        })
        ki += 4
    params["blocks"] = blocks
    params["lnf_w"] = jnp.ones((D,), jnp.float32)
    params["lnf_b"] = jnp.zeros((D,), jnp.float32)
    return params


# ---------------- forward pass ----------------

def gpt2_forward(params, ids, cfg):
    B, T = ids.shape
    D, H, V = cfg["n_embd"], cfg["n_head"], cfg["vocab_size"]
    hd = D // H

    # token + position embeddings (gather is XLA glue; tables stay in HBM)
    x = jnp.take(params["wte"], ids, axis=0) + params["wpe"][:T][None, :, :]
    x2d = x.reshape(B * T, D).astype(jnp.float32)          # f32 residual stream

    for blk in params["blocks"]:
        # --- attention sub-block (LN fused into qkv; residual fused into proj) ---
        qkv = ln_linear(x2d, blk["ln1_w"], blk["ln1_b"], blk["w_qkv"], blk["b_qkv"],
                        out_dtype=jnp.bfloat16)                       # (B*T, 3D) bf16
        qkv = qkv.reshape(B, T, 3, H, hd).transpose(2, 0, 3, 1, 4)    # (3, B, H, T, hd)
        attn = flash_attention(qkv[0], qkv[1], qkv[2])                # (B, H, T, hd) bf16
        attn2d = attn.transpose(0, 2, 1, 3).reshape(B * T, D)         # (B*T, D) bf16
        x2d = linear_residual(attn2d, blk["w_proj"], blk["b_proj"], x2d)

        # --- MLP sub-block (LN fused into fc; GELU in epilogue; residual fused) ---
        h = ln_linear(x2d, blk["ln2_w"], blk["ln2_b"], blk["w_fc"], blk["b_fc"],
                      activation="gelu", out_dtype=jnp.bfloat16)      # (B*T, 4D) bf16
        x2d = linear_residual(h, blk["w_mproj"], blk["b_mproj"], x2d)

    # final LayerNorm fused into the tied lm_head (logits = LN(x) @ wte.T, no bias)
    logits = ln_linear(x2d, params["lnf_w"], params["lnf_b"], params["wte_t"],
                       None, out_dtype=jnp.float32)                   # (B*T, V) f32
    return logits.reshape(B, T, V)


if __name__ == "__main__":
    cfg = dict(vocab_size=256, block_size=16, n_layer=2, n_head=4,
               n_embd=32, dropout=0.0, bias=True)
    key = jax.random.PRNGKey(0)
    pkey, ikey = jax.random.split(key)
    params = init_params(pkey, cfg)

    B, T = 2, 8
    ids = jax.random.randint(ikey, (B, T), 0, cfg["vocab_size"], dtype=jnp.int32)

    fwd = jax.jit(functools.partial(gpt2_forward, cfg=cfg))
    logits = jax.block_until_ready(fwd(params, ids))

    assert logits.shape == (B, T, cfg["vocab_size"]), logits.shape
    assert bool(jnp.all(jnp.isfinite(logits)))
    print("KERNEL_OK")
</pallas_src>

<mosaic_0001>
module attributes {stable_mosaic.version = 11 : i64} {
  func.func @_ln_matmul_kernel(%arg0: i32, %arg1: i32, %arg2: memref<16x32xf32, #tpu.memory_space<vmem>>, %arg3: memref<1x32xf32, #tpu.memory_space<vmem>>, %arg4: memref<1x32xf32, #tpu.memory_space<vmem>>, %arg5: memref<32x96xbf16, #tpu.memory_space<vmem>>, %arg6: memref<1x96xf32, #tpu.memory_space<vmem>>, %arg7: memref<16x96xbf16, #tpu.memory_space<vmem>>) attributes {dimension_semantics = [#tpu.dimension_semantics<parallel>, #tpu.dimension_semantics<parallel>], iteration_bounds = array<i64: 1, 1>, scalar_prefetch = 0 : i64, scratch_operands = 0 : i64, tpu.core_type = #tpu.core_type<tc>, window_params = [{transform_indices = @transform_0, window_bounds = array<i64: 16, 32>}, {pipeline_mode = #tpu.pipeline_mode<synchronous>, transform_indices = @transform_1, window_bounds = array<i64: 1, 32>}, {pipeline_mode = #tpu.pipeline_mode<synchronous>, transform_indices = @transform_2, window_bounds = array<i64: 1, 32>}, {transform_indices = @transform_3, window_bounds = array<i64: 32, 96>}, {transform_indices = @transform_4, window_bounds = array<i64: 1, 96>}, {transform_indices = @transform_5, window_bounds = array<i64: 16, 96>}]} {
    %c0 = arith.constant 0 : index
    %c0_0 = arith.constant 0 : index
    %0 = vector.load %arg2[%c0, %c0_0] : memref<16x32xf32, #tpu.memory_space<vmem>>, vector<16x32xf32>
    %cst = arith.constant dense<0.000000e+00> : vector<16xf32>
    %1 = vector.multi_reduction <add>, %0, %cst [1] : vector<16x32xf32> to vector<16xf32>
    %2 = vector.shape_cast %1 : vector<16xf32> to vector<16x1xf32>
    %cst_1 = arith.constant 3.200000e+01 : f32
    %3 = vector.broadcast %cst_1 : f32 to vector<16x1xf32>
    %4 = arith.divf %2, %3 : vector<16x1xf32>
    %5 = vector.broadcast %4 : vector<16x1xf32> to vector<16x32xf32>
    %6 = arith.subf %0, %5 : vector<16x32xf32>
    %7 = arith.mulf %6, %6 : vector<16x32xf32>
    %cst_2 = arith.constant dense<0.000000e+00> : vector<16xf32>
    %8 = vector.multi_reduction <add>, %7, %cst_2 [1] : vector<16x32xf32> to vector<16xf32>
    %9 = vector.shape_cast %8 : vector<16xf32> to vector<16x1xf32>
    %cst_3 = arith.constant 3.200000e+01 : f32
    %10 = vector.broadcast %cst_3 : f32 to vector<16x1xf32>
    %11 = arith.divf %9, %10 : vector<16x1xf32>
    %cst_4 = arith.constant 9.99999974E-6 : f32
    %12 = vector.broadcast %cst_4 : f32 to vector<16x1xf32>
    %13 = arith.addf %11, %12 : vector<16x1xf32>
    %14 = math.rsqrt %13 : vector<16x1xf32>
    %15 = vector.broadcast %14 : vector<16x1xf32> to vector<16x32xf32>
    %16 = arith.mulf %6, %15 : vector<16x32xf32>
    %c0_5 = arith.constant 0 : index
    %c0_6 = arith.constant 0 : index
    %17 = vector.load %arg3[%c0_5, %c0_6] : memref<1x32xf32, #tpu.memory_space<vmem>>, vector<1x32xf32>
    %18 = vector.broadcast %17 : vector<1x32xf32> to vector<16x32xf32>
    %19 = arith.mulf %16, %18 : vector<16x32xf32>
    %c0_7 = arith.constant 0 : index
    %c0_8 = arith.constant 0 : index
    %20 = vector.load %arg4[%c0_7, %c0_8] : memref<1x32xf32, #tpu.memory_space<vmem>>, vector<1x32xf32>
    %21 = vector.broadcast %20 : vector<1x32xf32> to vector<16x32xf32>
    %22 = arith.addf %19, %21 : vector<16x32xf32>
    %23 = arith.truncf %22 : vector<16x32xf32> to vector<16x32xbf16>
    %c0_9 = arith.constant 0 : index
    %c0_10 = arith.constant 0 : index
    %24 = vector.load %arg5[%c0_9, %c0_10] : memref<32x96xbf16, #tpu.memory_space<vmem>>, vector<32x96xbf16>
    %cst_11 = arith.constant dense<0.000000e+00> : vector<16x96xf32>
    %25 = tpu.matmul %23, %24, %cst_11 {dimension_numbers = #tpu.dot_dimension_numbers<[1], [0], [0], [1], [0, 0, 1, 1], [], []>} : vector<16x32xbf16>, vector<32x96xbf16>, vector<16x96xf32> -> vector<16x96xf32>
    %c0_12 = arith.constant 0 : index
    %c0_13 = arith.constant 0 : index
    %26 = vector.load %arg6[%c0_12, %c0_13] : memref<1x96xf32, #tpu.memory_space<vmem>>, vector<1x96xf32>
    %27 = vector.broadcast %26 : vector<1x96xf32> to vector<16x96xf32>
    %28 = arith.addf %25, %27 : vector<16x96xf32>
    %29 = arith.truncf %28 : vector<16x96xf32> to vector<16x96xbf16>
    %c0_14 = arith.constant 0 : index
    %c0_15 = arith.constant 0 : index
    %30 = vector.load %arg7[%c0_14, %c0_15] : memref<16x96xbf16, #tpu.memory_space<vmem>>, vector<16x96xbf16>
    tpu.vector_store %arg7[%c0_14, %c0_15], %29 {strides = array<i32>} : memref<16x96xbf16, #tpu.memory_space<vmem>>, vector<16x96xbf16>,
    return
  }
  func.func @transform_0(%arg0: i32, %arg1: i32) -> (i32, i32) {
    %c0_i32 = arith.constant 0 : i32
    %c0_i32_0 = arith.constant 0 : i32
    return %arg0, %c0_i32 : i32, i32
  }
  func.func @transform_1(%arg0: i32, %arg1: i32) -> (i32, i32) {
    %c0_i32 = arith.constant 0 : i32
    %c0_i32_0 = arith.constant 0 : i32
    %c0_i32_1 = arith.constant 0 : i32
    return %c0_i32, %c0_i32_0 : i32, i32
  }
  func.func @transform_2(%arg0: i32, %arg1: i32) -> (i32, i32) {
    %c0_i32 = arith.constant 0 : i32
    %c0_i32_0 = arith.constant 0 : i32
    %c0_i32_1 = arith.constant 0 : i32
    return %c0_i32, %c0_i32_0 : i32, i32
  }
  func.func @transform_3(%arg0: i32, %arg1: i32) -> (i32, i32) {
    %c0_i32 = arith.constant 0 : i32
    %c0_i32_0 = arith.constant 0 : i32
    return %c0_i32, %arg1 : i32, i32
  }
  func.func @transform_4(%arg0: i32, %arg1: i32) -> (i32, i32) {
    %c0_i32 = arith.constant 0 : i32
    %c0_i32_0 = arith.constant 0 : i32
    return %c0_i32, %arg1 : i32, i32
  }
  func.func @transform_5(%arg0: i32, %arg1: i32) -> (i32, i32) {
    %c0_i32 = arith.constant 0 : i32
    return %arg0, %arg1 : i32, i32
  }
}

module attributes {stable_mosaic.version = 11 : i64} {
  func.func @_flash_attn_kernel(%arg0: i32, %arg1: i32, %arg2: i32, %arg3: i32, %arg4: memref<1x1x8x8xbf16, #tpu.memory_space<vmem>>, %arg5: memref<1x1x8x8xbf16, #tpu.memory_space<vmem>>, %arg6: memref<1x1x8x8xbf16, #tpu.memory_space<vmem>>, %arg7: memref<1x1x8x8xbf16, #tpu.memory_space<vmem>>, %arg8: memref<8x1xf32, #tpu.memory_space<vmem>>, %arg9: memref<8x1xf32, #tpu.memory_space<vmem>>, %arg10: memref<8x8xf32, #tpu.memory_space<vmem>>) attributes {dimension_semantics = [#tpu.dimension_semantics<parallel>, #tpu.dimension_semantics<parallel>, #tpu.dimension_semantics<parallel>, #tpu.dimension_semantics<arbitrary>], iteration_bounds = array<i64: 2, 4, 1, 1>, scalar_prefetch = 0 : i64, scratch_operands = 3 : i64, tpu.core_type = #tpu.core_type<tc>, window_params = [{transform_indices = @transform_0, window_bounds = array<i64: 1, 1, 8, 8>}, {transform_indices = @transform_1, window_bounds = array<i64: 1, 1, 8, 8>}, {transform_indices = @transform_2, window_bounds = array<i64: 1, 1, 8, 8>}, {transform_indices = @transform_3, window_bounds = array<i64: 1, 1, 8, 8>}]} {
    %c0_i32 = arith.constant 0 : i32
    %0 = arith.cmpi eq, %arg3, %c0_i32 : i32
    %1 = arith.extui %0 : i1 to i32
    %c0_i32_0 = arith.constant 0 : i32
    %2 = arith.cmpi ne, %1, %c0_i32_0 : i32
    scf.if %2 {
      %cst = arith.constant 0xFF800000 : f32
      %12 = vector.broadcast %cst : f32 to vector<8x1xf32>
      %c0 = arith.constant 0 : index
      %c0_6 = arith.constant 0 : index
      %13 = vector.load %arg8[%c0, %c0_6] : memref<8x1xf32, #tpu.memory_space<vmem>>, vector<8x1xf32>
      tpu.vector_store %arg8[%c0, %c0_6], %12 {strides = array<i32>} : memref<8x1xf32, #tpu.memory_space<vmem>>, vector<8x1xf32>,
      %cst_7 = arith.constant 0.000000e+00 : f32
      %14 = vector.broadcast %cst_7 : f32 to vector<8x1xf32>
      %c0_8 = arith.constant 0 : index
      %c0_9 = arith.constant 0 : index
      %15 = vector.load %arg9[%c0_8, %c0_9] : memref<8x1xf32, #tpu.memory_space<vmem>>, vector<8x1xf32>
      tpu.vector_store %arg9[%c0_8, %c0_9], %14 {strides = array<i32>} : memref<8x1xf32, #tpu.memory_space<vmem>>, vector<8x1xf32>,
      %cst_10 = arith.constant 0.000000e+00 : f32
      %16 = vector.broadcast %cst_10 : f32 to vector<8x8xf32>
      %c0_11 = arith.constant 0 : index
      %c0_12 = arith.constant 0 : index
      %17 = vector.load %arg10[%c0_11, %c0_12] : memref<8x8xf32, #tpu.memory_space<vmem>>, vector<8x8xf32>
      tpu.vector_store %arg10[%c0_11, %c0_12], %16 {strides = array<i32>} : memref<8x8xf32, #tpu.memory_space<vmem>>, vector<8x8xf32>,
    } else {
    }
    %c8_i32 = arith.constant 8 : i32
    %3 = arith.muli %arg2, %c8_i32 : i32
    %c8_i32_1 = arith.constant 8 : i32
    %4 = arith.muli %arg3, %c8_i32_1 : i32
    %c8_i32_2 = arith.constant 8 : i32
    %5 = arith.addi %3, %c8_i32_2 : i32
    %6 = arith.cmpi slt, %4, %5 : i32
    %7 = arith.extui %6 : i1 to i32
    %c0_i32_3 = arith.constant 0 : i32
    %8 = arith.cmpi ne, %7, %c0_i32_3 : i32
    scf.if %8 {
      %c0 = arith.constant 0 : index
      %c0_6 = arith.constant 0 : index
      %c0_7 = arith.constant 0 : index
      %c0_8 = arith.constant 0 : index
      %12 = vector.load %arg4[%c0, %c0_6, %c0_7, %c0_8] : memref<1x1x8x8xbf16, #tpu.memory_space<vmem>>, vector<1x1x8x8xbf16>
      %13 = vector.shape_cast %12 : vector<1x1x8x8xbf16> to vector<8x8xbf16>
      %14 = arith.extf %13 : vector<8x8xbf16> to vector<8x8xf32>
      %cst = arith.constant 0.353553385 : f32
      %15 = vector.broadcast %cst : f32 to vector<8x8xf32>
      %16 = arith.mulf %14, %15 : vector<8x8xf32>
      %17 = arith.truncf %16 : vector<8x8xf32> to vector<8x8xbf16>
      %c0_9 = arith.constant 0 : index
      %c0_10 = arith.constant 0 : index
      %c0_11 = arith.constant 0 : index
      %c0_12 = arith.constant 0 : index
      %18 = vector.load %arg5[%c0_9, %c0_10, %c0_11, %c0_12] : memref<1x1x8x8xbf16, #tpu.memory_space<vmem>>, vector<1x1x8x8xbf16>
      %19 = vector.shape_cast %18 : vector<1x1x8x8xbf16> to vector<8x8xbf16>
      %cst_13 = arith.constant dense<0.000000e+00> : vector<8x8xf32>
      %20 = tpu.matmul %17, %19, %cst_13 {dimension_numbers = #tpu.dot_dimension_numbers<[1], [1], [0], [0], [0, 0, 1, 0], [], []>} : vector<8x8xbf16>, vector<8x8xbf16>, vector<8x8xf32> -> vector<8x8xf32>
      %21 = tpu.iota {dimensions = array<i32: 0>} : vector<8x8xi32>
      %22 = vector.broadcast %3 : i32 to vector<8x8xi32>
      %23 = arith.addi %22, %21 : vector<8x8xi32>
      %24 = tpu.iota {dimensions = array<i32: 1>} : vector<8x8xi32>
      %25 = vector.broadcast %4 : i32 to vector<8x8xi32>
      %26 = arith.addi %25, %24 : vector<8x8xi32>
      %27 = arith.cmpi sge, %23, %26 : vector<8x8xi32>
      %cst_14 = arith.constant 0xFF800000 : f32
      %28 = vector.broadcast %cst_14 : f32 to vector<8x8xf32>
      %29 = arith.select %27, %20, %28 : vector<8x8xi1>, vector<8x8xf32>
      %c0_15 = arith.constant 0 : index
      %c0_16 = arith.constant 0 : index
      %30 = vector.load %arg8[%c0_15, %c0_16] : memref<8x1xf32, #tpu.memory_space<vmem>>, vector<8x1xf32>
      %cst_17 = arith.constant dense<0xFF800000> : vector<8xf32>
      %31 = vector.multi_reduction <maximumf>, %29, %cst_17 [1] : vector<8x8xf32> to vector<8xf32>
      %32 = vector.shape_cast %31 : vector<8xf32> to vector<8x1xf32>
      %33 = arith.maximumf %30, %32 : vector<8x1xf32>
      %34 = arith.subf %30, %33 : vector<8x1xf32>
      %35 = math.exp %34 : vector<8x1xf32>
      %36 = vector.broadcast %33 : vector<8x1xf32> to vector<8x8xf32>
      %37 = arith.subf %29, %36 : vector<8x8xf32>
      %38 = math.exp %37 : vector<8x8xf32>
      %c0_18 = arith.constant 0 : index
      %c0_19 = arith.constant 0 : index
      %39 = vector.load %arg9[%c0_18, %c0_19] : memref<8x1xf32, #tpu.memory_space<vmem>>, vector<8x1xf32>
      %40 = arith.mulf %35, %39 : vector<8x1xf32>
      %cst_20 = arith.constant dense<0.000000e+00> : vector<8xf32>
      %41 = vector.multi_reduction <add>, %38, %cst_20 [1] : vector<8x8xf32> to vector<8xf32>
      %42 = vector.shape_cast %41 : vector<8xf32> to vector<8x1xf32>
      %43 = arith.addf %40, %42 : vector<8x1xf32>
      %c0_21 = arith.constant 0 : index
      %c0_22 = arith.constant 0 : index
      %44 = vector.load %arg9[%c0_21, %c0_22] : memref<8x1xf32, #tpu.memory_space<vmem>>, vector<8x1xf32>
      tpu.vector_store %arg9[%c0_21, %c0_22], %43 {strides = array<i32>} : memref<8x1xf32, #tpu.memory_space<vmem>>, vector<8x1xf32>,
      %c0_23 = arith.constant 0 : index
      %c0_24 = arith.constant 0 : index
      %45 = vector.load %arg10[%c0_23, %c0_24] : memref<8x8xf32, #tpu.memory_space<vmem>>, vector<8x8xf32>
      %46 = vector.broadcast %35 : vector<8x1xf32> to vector<8x8xf32>
      %47 = arith.mulf %46, %45 : vector<8x8xf32>
      %48 = arith.truncf %38 : vector<8x8xf32> to vector<8x8xbf16>
      %c0_25 = arith.constant 0 : index
      %c0_26 = arith.constant 0 : index
      %c0_27 = arith.constant 0 : index
      %c0_28 = arith.constant 0 : index
      %49 = vector.load %arg6[%c0_25, %c0_26, %c0_27, %c0_28] : memref<1x1x8x8xbf16, #tpu.memory_space<vmem>>, vector<1x1x8x8xbf16>
      %50 = vector.shape_cast %49 : vector<1x1x8x8xbf16> to vector<8x8xbf16>
      %cst_29 = arith.constant dense<0.000000e+00> : vector<8x8xf32>
      %51 = tpu.matmul %48, %50, %cst_29 {dimension_numbers = #tpu.dot_dimension_numbers<[1], [0], [0], [1], [0, 0, 1, 1], [], []>} : vector<8x8xbf16>, vector<8x8xbf16>, vector<8x8xf32> -> vector<8x8xf32>
      %52 = arith.addf %47, %51 : vector<8x8xf32>
      %c0_30 = arith.constant 0 : index
      %c0_31 = arith.constant 0 : index
      %53 = vector.load %arg10[%c0_30, %c0_31] : memref<8x8xf32, #tpu.memory_space<vmem>>, vector<8x8xf32>
      tpu.vector_store %arg10[%c0_30, %c0_31], %52 {strides = array<i32>} : memref<8x8xf32, #tpu.memory_space<vmem>>, vector<8x8xf32>,
      %c0_32 = arith.constant 0 : index
      %c0_33 = arith.constant 0 : index
      %54 = vector.load %arg8[%c0_32, %c0_33] : memref<8x1xf32, #tpu.memory_space<vmem>>, vector<8x1xf32>
      tpu.vector_store %arg8[%c0_32, %c0_33], %33 {strides = array<i32>} : memref<8x1xf32, #tpu.memory_space<vmem>>, vector<8x1xf32>,
    } else {
    }
    %c0_i32_4 = arith.constant 0 : i32
    %9 = arith.cmpi eq, %arg3, %c0_i32_4 : i32
    %10 = arith.extui %9 : i1 to i32
    %c0_i32_5 = arith.constant 0 : i32
    %11 = arith.cmpi ne, %10, %c0_i32_5 : i32
    scf.if %11 {
      %c0 = arith.constant 0 : index
      %c0_6 = arith.constant 0 : index
      %12 = vector.load %arg10[%c0, %c0_6] : memref<8x8xf32, #tpu.memory_space<vmem>>, vector<8x8xf32>
      %c0_7 = arith.constant 0 : index
      %c0_8 = arith.constant 0 : index
      %13 = vector.load %arg9[%c0_7, %c0_8] : memref<8x1xf32, #tpu.memory_space<vmem>>, vector<8x1xf32>
      %14 = vector.broadcast %13 : vector<8x1xf32> to vector<8x8xf32>
      %15 = arith.divf %12, %14 : vector<8x8xf32>
      %16 = arith.truncf %15 : vector<8x8xf32> to vector<8x8xbf16>
      %c0_9 = arith.constant 0 : index
      %c0_10 = arith.constant 0 : index
      %c0_11 = arith.constant 0 : index
      %c0_12 = arith.constant 0 : index
      %17 = vector.load %arg7[%c0_9, %c0_10, %c0_11, %c0_12] : memref<1x1x8x8xbf16, #tpu.memory_space<vmem>>, vector<1x1x8x8xbf16>
      %18 = vector.shape_cast %17 : vector<1x1x8x8xbf16> to vector<8x8xbf16>
      %19 = vector.shape_cast %16 : vector<8x8xbf16> to vector<1x1x8x8xbf16>
      tpu.vector_store %arg7[%c0_9, %c0_10, %c0_11, %c0_12], %19 {strides = array<i32>} : memref<1x1x8x8xbf16, #tpu.memory_space<vmem>>, vector<1x1x8x8xbf16>,
    } else {
    }
    return
  }
  func.func @transform_0(%arg0: i32, %arg1: i32, %arg2: i32, %arg3: i32) -> (i32, i32, i32, i32) {
    %c0_i32 = arith.constant 0 : i32
    %c0_i32_0 = arith.constant 0 : i32
    return %arg0, %arg1, %arg2, %c0_i32 : i32, i32, i32, i32
  }
  func.func @transform_1(%arg0: i32, %arg1: i32, %arg2: i32, %arg3: i32) -> (i32, i32, i32, i32) {
    %c0_i32 = arith.constant 0 : i32
    %c0_i32_0 = arith.constant 0 : i32
    return %arg0, %arg1, %arg3, %c0_i32 : i32, i32, i32, i32
  }
  func.func @transform_2(%arg0: i32, %arg1: i32, %arg2: i32, %arg3: i32) -> (i32, i32, i32, i32) {
    %c0_i32 = arith.constant 0 : i32
    %c0_i32_0 = arith.constant 0 : i32
    return %arg0, %arg1, %arg3, %c0_i32 : i32, i32, i32, i32
  }
  func.func @transform_3(%arg0: i32, %arg1: i32, %arg2: i32, %arg3: i32) -> (i32, i32, i32, i32) {
    %c0_i32 = arith.constant 0 : i32
    %c0_i32_0 = arith.constant 0 : i32
    return %arg0, %arg1, %arg2, %c0_i32 : i32, i32, i32, i32
  }
}

module attributes {stable_mosaic.version = 11 : i64} {
  func.func @_matmul_residual_kernel(%arg0: i32, %arg1: i32, %arg2: memref<16x32xbf16, #tpu.memory_space<vmem>>, %arg3: memref<32x32xbf16, #tpu.memory_space<vmem>>, %arg4: memref<1x32xf32, #tpu.memory_space<vmem>>, %arg5: memref<16x32xf32, #tpu.memory_space<vmem>>, %arg6: memref<16x32xf32, #tpu.memory_space<vmem>>) attributes {dimension_semantics = [#tpu.dimension_semantics<parallel>, #tpu.dimension_semantics<parallel>], iteration_bounds = array<i64: 1, 1>, scalar_prefetch = 0 : i64, scratch_operands = 0 : i64, tpu.core_type = #tpu.core_type<tc>, window_params = [{transform_indices = @transform_0, window_bounds = array<i64: 16, 32>}, {transform_indices = @transform_1, window_bounds = array<i64: 32, 32>}, {transform_indices = @transform_2, window_bounds = array<i64: 1, 32>}, {transform_indices = @transform_3, window_bounds = array<i64: 16, 32>}, {transform_indices = @transform_4, window_bounds = array<i64: 16, 32>}]} {
    %c0 = arith.constant 0 : index
    %c0_0 = arith.constant 0 : index
    %0 = vector.load %arg2[%c0, %c0_0] : memref<16x32xbf16, #tpu.memory_space<vmem>>, vector<16x32xbf16>
    %c0_1 = arith.constant 0 : index
    %c0_2 = arith.constant 0 : index
    %1 = vector.load %arg3[%c0_1, %c0_2] : memref<32x32xbf16, #tpu.memory_space<vmem>>, vector<32x32xbf16>
    %cst = arith.constant dense<0.000000e+00> : vector<16x32xf32>
    %2 = tpu.matmul %0, %1, %cst {dimension_numbers = #tpu.dot_dimension_numbers<[1], [0], [0], [1], [0, 0, 1, 1], [], []>} : vector<16x32xbf16>, vector<32x32xbf16>, vector<16x32xf32> -> vector<16x32xf32>
    %c0_3 = arith.constant 0 : index
    %c0_4 = arith.constant 0 : index
    %3 = vector.load %arg4[%c0_3, %c0_4] : memref<1x32xf32, #tpu.memory_space<vmem>>, vector<1x32xf32>
    %4 = vector.broadcast %3 : vector<1x32xf32> to vector<16x32xf32>
    %5 = arith.addf %2, %4 : vector<16x32xf32>
    %c0_5 = arith.constant 0 : index
    %c0_6 = arith.constant 0 : index
    %6 = vector.load %arg5[%c0_5, %c0_6] : memref<16x32xf32, #tpu.memory_space<vmem>>, vector<16x32xf32>
    %7 = arith.addf %5, %6 : vector<16x32xf32>
    %c0_7 = arith.constant 0 : index
    %c0_8 = arith.constant 0 : index
    %8 = vector.load %arg6[%c0_7, %c0_8] : memref<16x32xf32, #tpu.memory_space<vmem>>, vector<16x32xf32>
    tpu.vector_store %arg6[%c0_7, %c0_8], %7 {strides = array<i32>} : memref<16x32xf32, #tpu.memory_space<vmem>>, vector<16x32xf32>,
    return
  }
  func.func @transform_0(%arg0: i32, %arg1: i32) -> (i32, i32) {
    %c0_i32 = arith.constant 0 : i32
    %c0_i32_0 = arith.constant 0 : i32
    return %arg0, %c0_i32 : i32, i32
  }
  func.func @transform_1(%arg0: i32, %arg1: i32) -> (i32, i32) {
    %c0_i32 = arith.constant 0 : i32
    %c0_i32_0 = arith.constant 0 : i32
    return %c0_i32, %arg1 : i32, i32
  }
  func.func @transform_2(%arg0: i32, %arg1: i32) -> (i32, i32) {
    %c0_i32 = arith.constant 0 : i32
    %c0_i32_0 = arith.constant 0 : i32
    return %c0_i32, %arg1 : i32, i32
  }
  func.func @transform_3(%arg0: i32, %arg1: i32) -> (i32, i32) {
    %c0_i32 = arith.constant 0 : i32
    return %arg0, %arg1 : i32, i32
  }
  func.func @transform_4(%arg0: i32, %arg1: i32) -> (i32, i32) {
    %c0_i32 = arith.constant 0 : i32
    return %arg0, %arg1 : i32, i32
  }
}

module attributes {stable_mosaic.version = 11 : i64} {
  func.func @_ln_matmul_kernel(%arg0: i32, %arg1: i32, %arg2: memref<16x32xf32, #tpu.memory_space<vmem>>, %arg3: memref<1x32xf32, #tpu.memory_space<vmem>>, %arg4: memref<1x32xf32, #tpu.memory_space<vmem>>, %arg5: memref<32x128xbf16, #tpu.memory_space<vmem>>, %arg6: memref<1x128xf32, #tpu.memory_space<vmem>>, %arg7: memref<16x128xbf16, #tpu.memory_space<vmem>>) attributes {dimension_semantics = [#tpu.dimension_semantics<parallel>, #tpu.dimension_semantics<parallel>], iteration_bounds = array<i64: 1, 1>, scalar_prefetch = 0 : i64, scratch_operands = 0 : i64, tpu.core_type = #tpu.core_type<tc>, window_params = [{transform_indices = @transform_0, window_bounds = array<i64: 16, 32>}, {pipeline_mode = #tpu.pipeline_mode<synchronous>, transform_indices = @transform_1, window_bounds = array<i64: 1, 32>}, {pipeline_mode = #tpu.pipeline_mode<synchronous>, transform_indices = @transform_2, window_bounds = array<i64: 1, 32>}, {transform_indices = @transform_3, window_bounds = array<i64: 32, 128>}, {transform_indices = @transform_4, window_bounds = array<i64: 1, 128>}, {transform_indices = @transform_5, window_bounds = array<i64: 16, 128>}]} {
    %c0 = arith.constant 0 : index
    %c0_0 = arith.constant 0 : index
    %0 = vector.load %arg2[%c0, %c0_0] : memref<16x32xf32, #tpu.memory_space<vmem>>, vector<16x32xf32>
    %cst = arith.constant dense<0.000000e+00> : vector<16xf32>
    %1 = vector.multi_reduction <add>, %0, %cst [1] : vector<16x32xf32> to vector<16xf32>
    %2 = vector.shape_cast %1 : vector<16xf32> to vector<16x1xf32>
    %cst_1 = arith.constant 3.200000e+01 : f32
    %3 = vector.broadcast %cst_1 : f32 to vector<16x1xf32>
    %4 = arith.divf %2, %3 : vector<16x1xf32>
    %5 = vector.broadcast %4 : vector<16x1xf32> to vector<16x32xf32>
    %6 = arith.subf %0, %5 : vector<16x32xf32>
    %7 = arith.mulf %6, %6 : vector<16x32xf32>
    %cst_2 = arith.constant dense<0.000000e+00> : vector<16xf32>
    %8 = vector.multi_reduction <add>, %7, %cst_2 [1] : vector<16x32xf32> to vector<16xf32>
    %9 = vector.shape_cast %8 : vector<16xf32> to vector<16x1xf32>
    %cst_3 = arith.constant 3.200000e+01 : f32
    %10 = vector.broadcast %cst_3 : f32 to vector<16x1xf32>
    %11 = arith.divf %9, %10 : vector<16x1xf32>
    %cst_4 = arith.constant 9.99999974E-6 : f32
    %12 = vector.broadcast %cst_4 : f32 to vector<16x1xf32>
    %13 = arith.addf %11, %12 : vector<16x1xf32>
    %14 = math.rsqrt %13 : vector<16x1xf32>
    %15 = vector.broadcast %14 : vector<16x1xf32> to vector<16x32xf32>
    %16 = arith.mulf %6, %15 : vector<16x32xf32>
    %c0_5 = arith.constant 0 : index
    %c0_6 = arith.constant 0 : index
    %17 = vector.load %arg3[%c0_5, %c0_6] : memref<1x32xf32, #tpu.memory_space<vmem>>, vector<1x32xf32>
    %18 = vector.broadcast %17 : vector<1x32xf32> to vector<16x32xf32>
    %19 = arith.mulf %16, %18 : vector<16x32xf32>
    %c0_7 = arith.constant 0 : index
    %c0_8 = arith.constant 0 : index
    %20 = vector.load %arg4[%c0_7, %c0_8] : memref<1x32xf32, #tpu.memory_space<vmem>>, vector<1x32xf32>
    %21 = vector.broadcast %20 : vector<1x32xf32> to vector<16x32xf32>
    %22 = arith.addf %19, %21 : vector<16x32xf32>
    %23 = arith.truncf %22 : vector<16x32xf32> to vector<16x32xbf16>
    %c0_9 = arith.constant 0 : index
    %c0_10 = arith.constant 0 : index
    %24 = vector.load %arg5[%c0_9, %c0_10] : memref<32x128xbf16, #tpu.memory_space<vmem>>, vector<32x128xbf16>
    %cst_11 = arith.constant dense<0.000000e+00> : vector<16x128xf32>
    %25 = tpu.matmul %23, %24, %cst_11 {dimension_numbers = #tpu.dot_dimension_numbers<[1], [0], [0], [1], [0, 0, 1, 1], [], []>} : vector<16x32xbf16>, vector<32x128xbf16>, vector<16x128xf32> -> vector<16x128xf32>
    %c0_12 = arith.constant 0 : index
    %c0_13 = arith.constant 0 : index
    %26 = vector.load %arg6[%c0_12, %c0_13] : memref<1x128xf32, #tpu.memory_space<vmem>>, vector<1x128xf32>
    %27 = vector.broadcast %26 : vector<1x128xf32> to vector<16x128xf32>
    %28 = arith.addf %25, %27 : vector<16x128xf32>
    %cst_14 = arith.constant 5.000000e-01 : f32
    %29 = vector.broadcast %cst_14 : f32 to vector<16x128xf32>
    %30 = arith.mulf %29, %28 : vector<16x128xf32>
    %cst_15 = arith.constant 0.707106769 : f32
    %31 = vector.broadcast %cst_15 : f32 to vector<16x128xf32>
    %32 = arith.mulf %28, %31 : vector<16x128xf32>
    %33 = math.erf %32 : vector<16x128xf32>
    %cst_16 = arith.constant 1.000000e+00 : f32
    %34 = vector.broadcast %cst_16 : f32 to vector<16x128xf32>
    %35 = arith.addf %34, %33 : vector<16x128xf32>
    %36 = arith.mulf %30, %35 : vector<16x128xf32>
    %37 = arith.truncf %36 : vector<16x128xf32> to vector<16x128xbf16>
    %c0_17 = arith.constant 0 : index
    %c0_18 = arith.constant 0 : index
    %38 = vector.load %arg7[%c0_17, %c0_18] : memref<16x128xbf16, #tpu.memory_space<vmem>>, vector<16x128xbf16>
    tpu.vector_store %arg7[%c0_17, %c0_18], %37 {strides = array<i32>} : memref<16x128xbf16, #tpu.memory_space<vmem>>, vector<16x128xbf16>,
    return
  }
  func.func @transform_0(%arg0: i32, %arg1: i32) -> (i32, i32) {
    %c0_i32 = arith.constant 0 : i32
    %c0_i32_0 = arith.constant 0 : i32
    return %arg0, %c0_i32 : i32, i32
  }
  func.func @transform_1(%arg0: i32, %arg1: i32) -> (i32, i32) {
    %c0_i32 = arith.constant 0 : i32
    %c0_i32_0 = arith.constant 0 : i32
    %c0_i32_1 = arith.constant 0 : i32
    return %c0_i32, %c0_i32_0 : i32, i32
  }
  func.func @transform_2(%arg0: i32, %arg1: i32) -> (i32, i32) {
    %c0_i32 = arith.constant 0 : i32
    %c0_i32_0 = arith.constant 0 : i32
    %c0_i32_1 = arith.constant 0 : i32
    return %c0_i32, %c0_i32_0 : i32, i32
  }
  func.func @transform_3(%arg0: i32, %arg1: i32) -> (i32, i32) {
    %c0_i32 = arith.constant 0 : i32
    %c0_i32_0 = arith.constant 0 : i32
    return %c0_i32, %arg1 : i32, i32
  }
  func.func @transform_4(%arg0: i32, %arg1: i32) -> (i32, i32) {
    %c0_i32 = arith.constant 0 : i32
    %c0_i32_0 = arith.constant 0 : i32
    return %c0_i32, %arg1 : i32, i32
  }
  func.func @transform_5(%arg0: i32, %arg1: i32) -> (i32, i32) {
    %c0_i32 = arith.constant 0 : i32
    return %arg0, %arg1 : i32, i32
  }
}

module attributes {stable_mosaic.version = 11 : i64} {
  func.func @_matmul_residual_kernel(%arg0: i32, %arg1: i32, %arg2: memref<16x128xbf16, #tpu.memory_space<vmem>>, %arg3: memref<128x32xbf16, #tpu.memory_space<vmem>>, %arg4: memref<1x32xf32, #tpu.memory_space<vmem>>, %arg5: memref<16x32xf32, #tpu.memory_space<vmem>>, %arg6: memref<16x32xf32, #tpu.memory_space<vmem>>) attributes {dimension_semantics = [#tpu.dimension_semantics<parallel>, #tpu.dimension_semantics<parallel>], iteration_bounds = array<i64: 1, 1>, scalar_prefetch = 0 : i64, scratch_operands = 0 : i64, tpu.core_type = #tpu.core_type<tc>, window_params = [{transform_indices = @transform_0, window_bounds = array<i64: 16, 128>}, {transform_indices = @transform_1, window_bounds = array<i64: 128, 32>}, {transform_indices = @transform_2, window_bounds = array<i64: 1, 32>}, {transform_indices = @transform_3, window_bounds = array<i64: 16, 32>}, {transform_indices = @transform_4, window_bounds = array<i64: 16, 32>}]} {
    %c0 = arith.constant 0 : index
    %c0_0 = arith.constant 0 : index
    %0 = vector.load %arg2[%c0, %c0_0] : memref<16x128xbf16, #tpu.memory_space<vmem>>, vector<16x128xbf16>
    %c0_1 = arith.constant 0 : index
    %c0_2 = arith.constant 0 : index
    %1 = vector.load %arg3[%c0_1, %c0_2] : memref<128x32xbf16, #tpu.memory_space<vmem>>, vector<128x32xbf16>
    %cst = arith.constant dense<0.000000e+00> : vector<16x32xf32>
    %2 = tpu.matmul %0, %1, %cst {dimension_numbers = #tpu.dot_dimension_numbers<[1], [0], [0], [1], [0, 0, 1, 1], [], []>} : vector<16x128xbf16>, vector<128x32xbf16>, vector<16x32xf32> -> vector<16x32xf32>
    %c0_3 = arith.constant 0 : index
    %c0_4 = arith.constant 0 : index
    %3 = vector.load %arg4[%c0_3, %c0_4] : memref<1x32xf32, #tpu.memory_space<vmem>>, vector<1x32xf32>
    %4 = vector.broadcast %3 : vector<1x32xf32> to vector<16x32xf32>
    %5 = arith.addf %2, %4 : vector<16x32xf32>
    %c0_5 = arith.constant 0 : index
    %c0_6 = arith.constant 0 : index
    %6 = vector.load %arg5[%c0_5, %c0_6] : memref<16x32xf32, #tpu.memory_space<vmem>>, vector<16x32xf32>
    %7 = arith.addf %5, %6 : vector<16x32xf32>
    %c0_7 = arith.constant 0 : index
    %c0_8 = arith.constant 0 : index
    %8 = vector.load %arg6[%c0_7, %c0_8] : memref<16x32xf32, #tpu.memory_space<vmem>>, vector<16x32xf32>
    tpu.vector_store %arg6[%c0_7, %c0_8], %7 {strides = array<i32>} : memref<16x32xf32, #tpu.memory_space<vmem>>, vector<16x32xf32>,
    return
  }
  func.func @transform_0(%arg0: i32, %arg1: i32) -> (i32, i32) {
    %c0_i32 = arith.constant 0 : i32
    %c0_i32_0 = arith.constant 0 : i32
    return %arg0, %c0_i32 : i32, i32
  }
  func.func @transform_1(%arg0: i32, %arg1: i32) -> (i32, i32) {
    %c0_i32 = arith.constant 0 : i32
    %c0_i32_0 = arith.constant 0 : i32
    return %c0_i32, %arg1 : i32, i32
  }
  func.func @transform_2(%arg0: i32, %arg1: i32) -> (i32, i32) {
    %c0_i32 = arith.constant 0 : i32
    %c0_i32_0 = arith.constant 0 : i32
    return %c0_i32, %arg1 : i32, i32
  }
  func.func @transform_3(%arg0: i32, %arg1: i32) -> (i32, i32) {
    %c0_i32 = arith.constant 0 : i32
    return %arg0, %arg1 : i32, i32
  }
  func.func @transform_4(%arg0: i32, %arg1: i32) -> (i32, i32) {
    %c0_i32 = arith.constant 0 : i32
    return %arg0, %arg1 : i32, i32
  }
}

module attributes {stable_mosaic.version = 11 : i64} {
  func.func @_ln_matmul_kernel(%arg0: i32, %arg1: i32, %arg2: memref<16x32xf32, #tpu.memory_space<vmem>>, %arg3: memref<1x32xf32, #tpu.memory_space<vmem>>, %arg4: memref<1x32xf32, #tpu.memory_space<vmem>>, %arg5: memref<32x256xbf16, #tpu.memory_space<vmem>>, %arg6: memref<16x256xf32, #tpu.memory_space<vmem>>) attributes {dimension_semantics = [#tpu.dimension_semantics<parallel>, #tpu.dimension_semantics<parallel>], iteration_bounds = array<i64: 1, 1>, scalar_prefetch = 0 : i64, scratch_operands = 0 : i64, tpu.core_type = #tpu.core_type<tc>, window_params = [{transform_indices = @transform_0, window_bounds = array<i64: 16, 32>}, {pipeline_mode = #tpu.pipeline_mode<synchronous>, transform_indices = @transform_1, window_bounds = array<i64: 1, 32>}, {pipeline_mode = #tpu.pipeline_mode<synchronous>, transform_indices = @transform_2, window_bounds = array<i64: 1, 32>}, {transform_indices = @transform_3, window_bounds = array<i64: 32, 256>}, {transform_indices = @transform_4, window_bounds = array<i64: 16, 256>}]} {
    %c0 = arith.constant 0 : index
    %c0_0 = arith.constant 0 : index
    %0 = vector.load %arg2[%c0, %c0_0] : memref<16x32xf32, #tpu.memory_space<vmem>>, vector<16x32xf32>
    %cst = arith.constant dense<0.000000e+00> : vector<16xf32>
    %1 = vector.multi_reduction <add>, %0, %cst [1] : vector<16x32xf32> to vector<16xf32>
    %2 = vector.shape_cast %1 : vector<16xf32> to vector<16x1xf32>
    %cst_1 = arith.constant 3.200000e+01 : f32
    %3 = vector.broadcast %cst_1 : f32 to vector<16x1xf32>
    %4 = arith.divf %2, %3 : vector<16x1xf32>
    %5 = vector.broadcast %4 : vector<16x1xf32> to vector<16x32xf32>
    %6 = arith.subf %0, %5 : vector<16x32xf32>
    %7 = arith.mulf %6, %6 : vector<16x32xf32>
    %cst_2 = arith.constant dense<0.000000e+00> : vector<16xf32>
    %8 = vector.multi_reduction <add>, %7, %cst_2 [1] : vector<16x32xf32> to vector<16xf32>
    %9 = vector.shape_cast %8 : vector<16xf32> to vector<16x1xf32>
    %cst_3 = arith.constant 3.200000e+01 : f32
    %10 = vector.broadcast %cst_3 : f32 to vector<16x1xf32>
    %11 = arith.divf %9, %10 : vector<16x1xf32>
    %cst_4 = arith.constant 9.99999974E-6 : f32
    %12 = vector.broadcast %cst_4 : f32 to vector<16x1xf32>
    %13 = arith.addf %11, %12 : vector<16x1xf32>
    %14 = math.rsqrt %13 : vector<16x1xf32>
    %15 = vector.broadcast %14 : vector<16x1xf32> to vector<16x32xf32>
    %16 = arith.mulf %6, %15 : vector<16x32xf32>
    %c0_5 = arith.constant 0 : index
    %c0_6 = arith.constant 0 : index
    %17 = vector.load %arg3[%c0_5, %c0_6] : memref<1x32xf32, #tpu.memory_space<vmem>>, vector<1x32xf32>
    %18 = vector.broadcast %17 : vector<1x32xf32> to vector<16x32xf32>
    %19 = arith.mulf %16, %18 : vector<16x32xf32>
    %c0_7 = arith.constant 0 : index
    %c0_8 = arith.constant 0 : index
    %20 = vector.load %arg4[%c0_7, %c0_8] : memref<1x32xf32, #tpu.memory_space<vmem>>, vector<1x32xf32>
    %21 = vector.broadcast %20 : vector<1x32xf32> to vector<16x32xf32>
    %22 = arith.addf %19, %21 : vector<16x32xf32>
    %23 = arith.truncf %22 : vector<16x32xf32> to vector<16x32xbf16>
    %c0_9 = arith.constant 0 : index
    %c0_10 = arith.constant 0 : index
    %24 = vector.load %arg5[%c0_9, %c0_10] : memref<32x256xbf16, #tpu.memory_space<vmem>>, vector<32x256xbf16>
    %cst_11 = arith.constant dense<0.000000e+00> : vector<16x256xf32>
    %25 = tpu.matmul %23, %24, %cst_11 {dimension_numbers = #tpu.dot_dimension_numbers<[1], [0], [0], [1], [0, 0, 1, 1], [], []>} : vector<16x32xbf16>, vector<32x256xbf16>, vector<16x256xf32> -> vector<16x256xf32>
    %c0_12 = arith.constant 0 : index
    %c0_13 = arith.constant 0 : index
    %26 = vector.load %arg6[%c0_12, %c0_13] : memref<16x256xf32, #tpu.memory_space<vmem>>, vector<16x256xf32>
    tpu.vector_store %arg6[%c0_12, %c0_13], %25 {strides = array<i32>} : memref<16x256xf32, #tpu.memory_space<vmem>>, vector<16x256xf32>,
    return
  }
  func.func @transform_0(%arg0: i32, %arg1: i32) -> (i32, i32) {
    %c0_i32 = arith.constant 0 : i32
    %c0_i32_0 = arith.constant 0 : i32
    return %arg0, %c0_i32 : i32, i32
  }
  func.func @transform_1(%arg0: i32, %arg1: i32) -> (i32, i32) {
    %c0_i32 = arith.constant 0 : i32
    %c0_i32_0 = arith.constant 0 : i32
    %c0_i32_1 = arith.constant 0 : i32
    return %c0_i32, %c0_i32_0 : i32, i32
  }
  func.func @transform_2(%arg0: i32, %arg1: i32) -> (i32, i32) {
    %c0_i32 = arith.constant 0 : i32
    %c0_i32_0 = arith.constant 0 : i32
    %c0_i32_1 = arith.constant 0 : i32
    return %c0_i32, %c0_i32_0 : i32, i32
  }
  func.func @transform_3(%arg0: i32, %arg1: i32) -> (i32, i32) {
    %c0_i32 = arith.constant 0 : i32
    %c0_i32_0 = arith.constant 0 : i32
    return %c0_i32, %arg1 : i32, i32
  }
  func.func @transform_4(%arg0: i32, %arg1: i32) -> (i32, i32) {
    %c0_i32 = arith.constant 0 : i32
    return %arg0, %arg1 : i32, i32
  }
}

</mosaic_0001>

<bundles_post_ra>
// kernel: gpt2_forward.11
= control target key start
LH: loop header
LB: loop body
LE: loop exit
PB: predicated region body
PF: predicated region fallthrough
CT: control target
= control target key end

     0   :  { %vm23_vm0 = vcmask 261120   ;;  %v181_v14 = vmov 0.0   ;;  %vm182_vm1 = vmmov 0   ;;  %vm145_vm2 = vcmask 781312   ;;  %s245_s0 = inlined_call_operand.vmem [shape: f32[16,32], index: 0, kind: input, shape index: {}]   ;;  %s246_s3 = inlined_call_operand.vmem [shape: bf16[32,96], index: 3, kind: input, shape index: {}]   ;;  %s247_s1 = inlined_call_operand.vmem [shape: f32[1,32], index: 1, kind: input, shape index: {}]   ;;  %s248_s2 = inlined_call_operand.vmem [shape: f32[1,32], index: 2, kind: input, shape index: {}]   ;;  %s249_s4 = inlined_call_operand.vmem [shape: f32[1,96], index: 4, kind: input, shape index: {}]   ;;  %s250_s5 = inlined_call_operand.vmem [shape: bf16[16,96], index: 5, kind: output, shape index: {}]  }
   0x1   :  { %v21_v0 = vld [vmem:[%s245_s0] sm:$0xff]  ;;  %v22_v1 = vld [vmem:[%s245_s0 + $0x8] sm:$0xff]  ;;  %165 = vmatprep.subr.bf16.mxu0 %v181_v14  ;;  %169 = vmatprep.mubr.msk.bf16.mxu0 %vm182_vm1, %v181_v14 }
   0x2   :  { %v24_v2 = vsel %vm23_vm0, %v21_v0, 0.0  ;;  %v27_v3 = vsel %vm23_vm0, %v22_v1, 0.0  ;;  %v175_v15 = vld [vmem:[%s246_s3 + $0x8] sm:$0xff]   ;;  %v176_v16 = vld [vmem:[%s246_s3] sm:$0xff]  }
   0x3   :  { %25 = vadd.xlane.f32.xlu0 %v24_v2  ;;  %166 = vmatpush3.bf16.msra.mxu0 %v175_v15  ;;  %v152_v25 = vld [vmem:[%s247_s1] ss:$0 sm:$0xff] }
   0x4   :  { %167 = vmatprep.subr.bf16.mxu0 %v181_v14  ;;  %v153_v29 = vld [vmem:[%s248_s2] ss:$0 sm:$0xff] }
   0x5   :  { %v154_v34 = vld [vmem:[%s249_s4] ss:$0 sm:$0xff] }
   0x7   :  { %28 = vadd.xlane.f32.xlu0 %v27_v3  ;;  %168 = vmatpush3.bf16.msra.mxu0 %v176_v16 }
  0x8c   :  { %v26_v4 = vpop.xlane.xlu0 %25 }
  0x8d   :  { %v31_v5 = vmul.f32 0.03125, %v26_v4 }
  0x8f   :  { %v33_v6 = vsub.f32 %v21_v0, %v31_v5 }
  0x90   :  { %v29_v7 = vpop.xlane.xlu0 %28 }
  0x91   :  { %v32_v8 = vmul.f32 0.03125, %v29_v7  ;;  %v35_v9 = vmul.f32 %v33_v6, %v33_v6 }
  0x93   :  { %v34_v10 = vsub.f32 %v22_v1, %v32_v8  ;;  %v37_v11 = vsel %vm23_vm0, %v35_v9, 0.0 }
  0x94   :  { %38 = vadd.xlane.f32.xlu1 %v37_v11 }
  0x95   :  { %v36_v12 = vmul.f32 %v34_v10, %v34_v10 }
  0x97   :  { %v40_v13 = vsel %vm23_vm0, %v36_v12, 0.0 }
  0x98   :  { %41 = vadd.xlane.f32.xlu1 %v40_v13 }
 0x11d   :  { %v39_v17 = vpop.xlane.xlu1 %38 }
 0x11e   :  { %v43_v18 = vmul.f32 0.03125, %v39_v17 }
 0x120   :  { %v45_v19 = vadd.f32 1e-05, %v43_v18 }
 0x121   :  { %v42_v20 = vpop.xlane.xlu1 %41 }
 0x122   :  { %177 = vrsqrt.f32 %v45_v19  ;;  %v44_v21 = vmul.f32 0.03125, %v42_v20 }
 0x124   :  { %v46_v22 = vadd.f32 1e-05, %v44_v21 }
 0x126   :  { %179 = vrsqrt.f32 %v46_v22 }
 0x12f   :  { %v178_v23 = vpop.eup %177 }
 0x130   :  { %v49_v24 = vmul.f32 %v178_v23, %v33_v6 }
 0x132   :  { %v58_v28 = vmul.f32 %v152_v25, %v49_v24 }
 0x133   :  { %v180_v26 = vpop.eup %179 }
 0x134   :  { %v50_v27 = vmul.f32 %v180_v26, %v34_v10  ;;  %v67_v31 = vadd.f32 %v153_v29, %v58_v28 }
 0x136   :  { %v59_v30 = vmul.f32 %v152_v25, %v50_v27 }
 0x138   :  { %v68_v32 = vadd.f32 %v153_v29, %v59_v30 }
 0x13a   :  { %v69_v33 = vpack.c.bf16 %v68_v32, %v67_v31 }
 0x13c   :  { %170 = vmatmul.mubr.msk.bf16.vlgmr.msra.gmra.mxu0 %vm23_vm0, %v69_v33 }
 0x1fc   :  { %v130_v35 = vpop.f32.mrf.mxu0 }
 0x1fd   :  { %v131_v36 = vadd.f32 %v154_v34, %v130_v35 }
 0x1fe   :  { %v171_v37 = vpop.f32.mrf.mxu0 }
 0x1ff   :  { %v160_v38 = vpack.c.bf16 %v131_v36, %v131_v36 }
 0x200   :  { %v133_v39 = vpop.f32.mrf.mxu0 }
 0x201   :  { %146 = vst.msk [vmem:[%s250_s5] sm:$0xf] %vm145_vm2, %v160_v38  ;;  %v134_v40 = vadd.f32 %v154_v34, %v133_v39 }
 0x202   :  { %v172_v41 = vpop.f32.mrf.mxu0 }
 0x203   :  { %v161_v42 = vpack.c.bf16 %v134_v40, %v134_v40 }
 0x205   :  { %147 = vst.msk [vmem:[%s250_s5 + $0x4] sm:$0xf] %vm145_vm2, %v161_v42 }

// kernel: gpt2_forward.12
= control target key start
LH: loop header
LB: loop body
LE: loop exit
PB: predicated region body
PF: predicated region fallthrough
CT: control target
= control target key end

     0   :  { %s792_s12 = smov 0   ;;  %s794_s13 = smov 0   ;;  %s866_s0 = inlined_call_operand.vmem [shape: bf16[2,4,8,8], index: 0, kind: input, shape index: {}]   ;;  %s867_s1 = inlined_call_operand.vmem [shape: bf16[2,4,8,8], index: 1, kind: input, shape index: {}]   ;;  %s868_s2 = inlined_call_operand.vmem [shape: bf16[2,4,8,8], index: 2, kind: input, shape index: {}]   ;;  %s869_s3 = inlined_call_operand.vmem [shape: bf16[2,4,8,8], index: 3, kind: output, shape index: {}]  }
   0x1   :  { %s796_s14 = smov 0   ;;  %s798_s15 = smov 0  }
   0x2   :  { %s800_s16 = smov 0  }
   0x3 LB: > { %s35_s17 = sadd.s32 1, %s758_s14  ;;  %s39_s18 = sadd.s32 1, %s762_s15  ;;  %s766_s16 = sphi %s800_s16, %s13_s16   ;;  %s762_s15 = sphi %s798_s15, %s873_s15   ;;  %s758_s14 = sphi %s796_s14, %s872_s14   ;;  %s754_s13 = sphi %s794_s13, %s871_s13   ;;  %s750_s12 = sphi %s792_s12, %s870_s12  }
   0x4   : > { %p37_p0 = scmp.ge.s32.totalorder %s35_s17, 4  ;;  %p647_p1 = scmp.ge.s32.totalorder %s766_s16, 1 }
   0x5   : > { %p217_p2 = scmp.lt.s32.totalorder %s766_s16, 9 }
   0x6   : > { %s875_s17 = smov (%p37_p0, %s35_s17), 0  ;;  %s877_s18 = smov (!%p37_p0, %s39_s18), %s762_s15 }
   0x7   : > { %p218_p3 = pnand %p647_p1, %p217_p2  ;;  %p41_p4 = scmp.ge.s32.totalorder %s877_s18, 2 }
   0x8   : > { %p275_p5 = scmp.lt.s32.totalorder (!%p218_p3), %s754_s13, 1  ;;  %p277_p6 = scmp.lt.s32.totalorder (!%p218_p3), %s750_s12, 3 }
   0x9   : > { %s879_s18 = smov (%p41_p4, %s877_s18), 0  ;;  %221 = sbr.rel (%p218_p3) target bundleno = 799 (0x31f), region = 32 }
   0xe   : > { %vm327_vm0 = vcmask 64512   ;;  %v768_v0 = vmov 0.0   ;;  %vm769_vm1 = vmmov 0   ;;  %s881_s13 = smov (!%p275_p5, %s754_s13), 1  ;;  %s883_s12 = smov (!%p277_p6, %s750_s12), 3  ;;  %vm324_vm2 = vcmask 7168  }
   0xf   : > { %664 = vmatprep.subr.bf16.mxu0 %v768_v0  ;;  %328 = vst.msk [vmem:[#allocation4] sm:$0xff] %vm327_vm0, %v768_v0  ;;  %666 = vmatprep.mubr.msk.bf16.mxu0 %vm769_vm1, %v768_v0  ;;  %s648_s19 = sshll.u32 %s881_s13, 2  ;;  %v770_v7 = vmov -inf   ;;  %v388_v8 = vlaneseq  ;;  %v771_v17 = vmov 0   ;;  %vm434_vm4 = vcmask 1043456  }
  0x10   : > { %670 = vmatprep.subr.bf16.mxu1 %v768_v0  ;;  %672 = vmatprep.mubr.msk.bf16.mxu1 %vm769_vm1, %v768_v0  ;;  %s283_s20 = sadd.s32 %s648_s19, %s883_s12  ;;  %325 = vst.msk [vmem:[#allocation2] sm:$0xff] %vm324_vm2, %v770_v7  ;;  %326 = vst.msk [vmem:[#allocation3] sm:$0xff] %vm324_vm2, %v768_v0  ;;  %vm494_vm5 = vcmask 60416  }
  0x11   : > { %s823_s21 = sshll.u32 %s283_s20, 2  ;;  %v389_v9 = vshrl.u32 %v388_v8, 7  ;;  %v393_v10 = vand.u32 127, %v388_v8  ;;  %720 = vset.pattern.permute.xlu0 %v771_v17  ;;  %721 = vset.pattern.permute.xlu1 %v771_v17 }
  0x12   : > { %s296_s24 = scalar_lea.vmem %s867_s1, %s823_s21  ;;  %s285_s27 = scalar_lea.vmem %s866_s0, %s823_s21 }
  0x13   : > { %v340_v1 = vld [vmem:[%s296_s24] sm:$0xf]  ;;  %vm396_vm3 = vcmp.ge.s32.totalorder %v389_v9, %v393_v10  ;;  %s307_s30 = scalar_lea.vmem %s868_s2, %s823_s21  ;;  %s318_s6 = scalar_lea.vmem %s869_s3, %s823_s21 }
  0x14   : > { %v346_v2 = vsel %vm327_vm0, %v340_v1, 0  ;;  %v336_v3 = vld [vmem:[%s285_s27] sm:$0xf] }
  0x15   : > { %665 = vmatpush3.bf16.xpose.msra.mxu0 %v346_v2  ;;  %v337_v4 = vunpack.c.l.bf16 %v336_v3  ;;  %v430_v22 = vld [vmem:[%s307_s30] sm:$0xf] }
  0x16   : > { %v436_v23 = vsel %vm434_vm4, %v430_v22, 0  ;;  %v422_v42 = vld [vmem:[#allocation4] sm:$0xff] }
  0x17   : > { %v338_v5 = vmul.f32 0.35355338, %v337_v4  ;;  %v398_v18 = vld [vmem:[#allocation2] sm:$0xff]  ;;  %671 = vmatpush3.bf16.msra.mxu1 %v436_v23  ;;  %v414_v32 = vld [vmem:[#allocation3] sm:$0xff] }
  0x19   : > { %v339_v6 = vpack.c.bf16 %v338_v5, %v338_v5 }
  0x1c   : > { %667 = vmatmul.mubr.msk.bf16.vlgmr.msra.gmra.mxu0 %vm327_vm0, %v339_v6 }
  0xdc   : > { %v382_v11 = vpop.f32.mrf.mxu0 }
  0xdd   : > { %v397_v12 = vsel %vm396_vm3, %v382_v11, -inf }
  0xde   : > { %v668_v13 = vpop.f32.mrf.mxu0  ;;  %v399_v14 = vsel %vm327_vm0, %v397_v12, -inf }
  0xdf   : > { %400 = vmax.xlane.f32.xlu0 %v399_v14 }
  0xe0   : > { %v385_v15 = vpop.f32.mrf.mxu0 }
  0xe2   : > { %v669_v16 = vpop.f32.mrf.mxu0 }
 0x168   : > { %v401_v19 = vpop.xlane.xlu0 %400 }
 0x169   : > { %v402_v20 = vmax.f32 %v398_v18, %v401_v19 }
 0x16b   : > { %v403_v21 = vsub.f32 %v398_v18, %v402_v20  ;;  %480 = vst.msk [vmem:[#allocation2] sm:$0xff] %vm324_vm2, %v402_v20  ;;  %408 = vperm.xlu0 %720, %v402_v20  }
 0x16d   : > { %v404_v30 = vmul.f32 1.442695, %v403_v21 }
 0x1e6   : > { %v409_v24 = vpop.permute.xlu0 %408 }
 0x1e7   : > { %v411_v25 = vsub.f32 %v397_v12, %v409_v24 }
 0x1e9   : > { %v412_v26 = vmul.f32 1.442695, %v411_v25 }
 0x1eb   : > { %722 = vpow2.f32 %v412_v26 }
 0x1ec   : > { %724 = vpow2.f32 %v404_v30 }
 0x1f8   : > { %v723_v27 = vpop.eup %722 }
 0x1f9   : > { %v416_v28 = vsel %vm327_vm0, %v723_v27, 0.0  ;;  %v429_v29 = vpack.c.bf16 %v723_v27, %v723_v27  ;;  %v725_v31 = vpop.eup %724 }
 0x1fa   : > { %417 = vadd.xlane.f32.xlu1 %v416_v28  ;;  %v415_v33 = vmul.f32 %v725_v31, %v414_v32 }
 0x1fb   : > { %673 = vmatmul.mubr.msk.bf16.vlgmr.msra.gmra.mxu1 %vm327_vm0, %v429_v29 }
 0x283   : > { %v418_v34 = vpop.xlane.xlu1 %417 }
 0x284   : > { %v419_v35 = vadd.f32 %v418_v34, %v415_v33 }
 0x286   : > { %421 = vst.msk [vmem:[#allocation3] sm:$0xff] %vm324_vm2, %v419_v35 }
 0x28d   : > { %v485_v36 = vld [vmem:[#allocation3] sm:$0xff] }
 0x28e   : > { %488 = vperm.xlu1 %721, %v485_v36  }
 0x292   : > { %425 = vperm.xlu1 %721, %v725_v31  }
 0x2bb   : > { %v472_v37 = vpop.f32.mrf.mxu1 }
 0x2bd   : > { %v674_v38 = vpop.f32.mrf.mxu1 }
 0x2bf   : > { %v475_v39 = vpop.f32.mrf.mxu1 }
 0x2c1   : > { %v675_v40 = vpop.f32.mrf.mxu1 }
 0x309   : > { %v489_v41 = vpop.permute.xlu1 %488 }
 0x30a   : > { %726 = vrcp.f32 %v489_v41 }
 0x30d   : > { %v426_v43 = vpop.permute.xlu1 %425 }
 0x30e   : > { %v428_v44 = vmul.f32 %v426_v43, %v422_v42 }
 0x310   : > { %v478_v45 = vadd.f32 %v472_v37, %v428_v44 }
 0x312   : > { %479 = vst.msk [vmem:[#allocation4] sm:$0xff] %vm327_vm0, %v478_v45 }
 0x317   : > { %v727_v46 = vpop.eup %726 }
 0x319   : > { %v484_v47 = vld [vmem:[#allocation4] sm:$0xff] }
 0x31a   : > { %v492_v48 = vmul.f32 %v727_v46, %v484_v47 }
 0x31c   : > { %v493_v49 = vpack.c.bf16 %v492_v48, %v492_v48 }
 0x31e   : > { %495 = vst.msk [vmem:[%s318_s6] sm:$0xf] %vm494_vm5, %v493_v49 }
 0x31f PF: > { %s13_s16 = sadd.s32 1, %s766_s16   ;;  %s870_s12 = smov %s758_s14 }
 0x320   : > { %p10_p7 = scmp.ge.s32.totalorder %s13_s16, 10   ;;  %s871_s13 = smov %s762_s15 }
 0x321   : > { %s872_s14 = smov %s875_s17  ;;  %s873_s15 = smov %s879_s18 }
 0x322   :  { %12 = sbr.rel (!%p10_p7) target bundleno = 3 (0x3), region = 80 }

// kernel: gpt2_forward.13
= control target key start
LH: loop header
LB: loop body
LE: loop exit
PB: predicated region body
PF: predicated region fallthrough
CT: control target
= control target key end

     0   :  { %v124_v0 = vmov 0.0   ;;  %vm125_vm0 = vmmov 0   ;;  %vm48_vm1 = vcmask 261120   ;;  %s178_s1 = inlined_call_operand.vmem [shape: bf16[32,32], index: 1, kind: input, shape index: {}]   ;;  %s179_s0 = inlined_call_operand.vmem [shape: bf16[16,32], index: 0, kind: input, shape index: {}]   ;;  %s180_s2 = inlined_call_operand.vmem [shape: f32[1,32], index: 2, kind: input, shape index: {}]   ;;  %s181_s3 = inlined_call_operand.vmem [shape: f32[16,32], index: 3, kind: input, shape index: {}]   ;;  %s182_s4 = inlined_call_operand.vmem [shape: f32[16,32], index: 4, kind: output, shape index: {}]  }
   0x1   :  { %111 = vmatprep.subr.bf16.mxu0 %v124_v0  ;;  %v121_v1 = vld [vmem:[%s178_s1 + $0x8] sm:$0xff]   ;;  %115 = vmatprep.mubr.msk.bf16.mxu0 %vm125_vm0, %v124_v0  ;;  %v122_v2 = vld [vmem:[%s178_s1] sm:$0xff]  }
   0x2   :  { %112 = vmatpush3.bf16.msra.mxu0 %v121_v1  ;;  %v123_v3 = vld [vmem:[%s179_s0] sm:$0xff]   ;;  %v94_v11 = vld [vmem:[%s181_s3 + $0x8] sm:$0xff] }
   0x3   :  { %113 = vmatprep.subr.bf16.mxu0 %v124_v0  ;;  %v103_v4 = vld [vmem:[%s180_s2] ss:$0 sm:$0xff] }
   0x4   :  { %v93_v6 = vld [vmem:[%s181_s3] sm:$0xff] }
   0x6   :  { %114 = vmatpush3.bf16.msra.mxu0 %v122_v2 }
   0x9   :  { %116 = vmatmul.mubr.msk.bf16.vlgmr.msra.gmra.mxu0 %vm48_vm1, %v123_v3 }
  0xc9   :  { %v86_v5 = vpop.f32.mrf.mxu0 }
  0xca   :  { %v87_v7 = vadd.f32 %v103_v4, %v86_v5 }
  0xcb   :  { %v117_v8 = vpop.f32.mrf.mxu0 }
  0xcc   :  { %v95_v9 = vadd.f32 %v93_v6, %v87_v7 }
  0xcd   :  { %v89_v10 = vpop.f32.mrf.mxu0 }
  0xce   :  { %97 = vst.msk [vmem:[%s182_s4] sm:$0xff] %vm48_vm1, %v95_v9  ;;  %v90_v12 = vadd.f32 %v103_v4, %v89_v10 }
  0xcf   :  { %v118_v13 = vpop.f32.mrf.mxu0 }
  0xd0   :  { %v96_v14 = vadd.f32 %v94_v11, %v90_v12 }
  0xd2   :  { %98 = vst.msk [vmem:[%s182_s4 + $0x8] sm:$0xff] %vm48_vm1, %v96_v14 }

// kernel: gpt2_forward.14
= control target key start
LH: loop header
LB: loop body
LE: loop exit
PB: predicated region body
PF: predicated region fallthrough
CT: control target
= control target key end

     0   :  { %vm23_vm0 = vcmask 261120   ;;  %v199_v14 = vmov 0.0   ;;  %vm200_vm1 = vmmov 0   ;;  %s260_s0 = inlined_call_operand.vmem [shape: f32[16,32], index: 0, kind: input, shape index: {}]   ;;  %s261_s3 = inlined_call_operand.vmem [shape: bf16[32,128], index: 3, kind: input, shape index: {}]   ;;  %s262_s1 = inlined_call_operand.vmem [shape: f32[1,32], index: 1, kind: input, shape index: {}]   ;;  %s263_s2 = inlined_call_operand.vmem [shape: f32[1,32], index: 2, kind: input, shape index: {}]   ;;  %s264_s4 = inlined_call_operand.vmem [shape: f32[1,128], index: 4, kind: input, shape index: {}]   ;;  %s265_s5 = inlined_call_operand.vmem [shape: bf16[16,128], index: 5, kind: output, shape index: {}]  }
   0x1   :  { %v21_v0 = vld [vmem:[%s260_s0] sm:$0xff]  ;;  %v22_v1 = vld [vmem:[%s260_s0 + $0x8] sm:$0xff]  ;;  %179 = vmatprep.subr.bf16.mxu0 %v199_v14  ;;  %183 = vmatprep.mubr.msk.bf16.mxu0 %vm200_vm1, %v199_v14 }
   0x2   :  { %v24_v2 = vsel %vm23_vm0, %v21_v0, 0.0  ;;  %v27_v3 = vsel %vm23_vm0, %v22_v1, 0.0  ;;  %v189_v15 = vld [vmem:[%s261_s3 + $0x8] sm:$0xff]   ;;  %v190_v16 = vld [vmem:[%s261_s3] sm:$0xff]  }
   0x3   :  { %25 = vadd.xlane.f32.xlu0 %v24_v2  ;;  %180 = vmatpush3.bf16.msra.mxu0 %v189_v15  ;;  %v161_v25 = vld [vmem:[%s262_s1] ss:$0 sm:$0xff] }
   0x4   :  { %181 = vmatprep.subr.bf16.mxu0 %v199_v14  ;;  %v162_v29 = vld [vmem:[%s263_s2] ss:$0 sm:$0xff] }
   0x5   :  { %v163_v34 = vld [vmem:[%s264_s4] ss:$0 sm:$0xff] }
   0x7   :  { %28 = vadd.xlane.f32.xlu0 %v27_v3  ;;  %182 = vmatpush3.bf16.msra.mxu0 %v190_v16 }
  0x8c   :  { %v26_v4 = vpop.xlane.xlu0 %25 }
  0x8d   :  { %v31_v5 = vmul.f32 0.03125, %v26_v4 }
  0x8f   :  { %v33_v6 = vsub.f32 %v21_v0, %v31_v5 }
  0x90   :  { %v29_v7 = vpop.xlane.xlu0 %28 }
  0x91   :  { %v32_v8 = vmul.f32 0.03125, %v29_v7  ;;  %v35_v9 = vmul.f32 %v33_v6, %v33_v6 }
  0x93   :  { %v34_v10 = vsub.f32 %v22_v1, %v32_v8  ;;  %v37_v11 = vsel %vm23_vm0, %v35_v9, 0.0 }
  0x94   :  { %38 = vadd.xlane.f32.xlu1 %v37_v11 }
  0x95   :  { %v36_v12 = vmul.f32 %v34_v10, %v34_v10 }
  0x97   :  { %v40_v13 = vsel %vm23_vm0, %v36_v12, 0.0 }
  0x98   :  { %41 = vadd.xlane.f32.xlu1 %v40_v13 }
 0x11d   :  { %v39_v17 = vpop.xlane.xlu1 %38 }
 0x11e   :  { %v43_v18 = vmul.f32 0.03125, %v39_v17 }
 0x120   :  { %v45_v19 = vadd.f32 1e-05, %v43_v18 }
 0x121   :  { %v42_v20 = vpop.xlane.xlu1 %41 }
 0x122   :  { %191 = vrsqrt.f32 %v45_v19  ;;  %v44_v21 = vmul.f32 0.03125, %v42_v20 }
 0x124   :  { %v46_v22 = vadd.f32 1e-05, %v44_v21 }
 0x126   :  { %193 = vrsqrt.f32 %v46_v22 }
 0x12f   :  { %v192_v23 = vpop.eup %191 }
 0x130   :  { %v49_v24 = vmul.f32 %v192_v23, %v33_v6 }
 0x132   :  { %v58_v28 = vmul.f32 %v161_v25, %v49_v24 }
 0x133   :  { %v194_v26 = vpop.eup %193 }
 0x134   :  { %v50_v27 = vmul.f32 %v194_v26, %v34_v10  ;;  %v67_v31 = vadd.f32 %v162_v29, %v58_v28 }
 0x136   :  { %v59_v30 = vmul.f32 %v161_v25, %v50_v27 }
 0x138   :  { %v68_v32 = vadd.f32 %v162_v29, %v59_v30 }
 0x13a   :  { %v69_v33 = vpack.c.bf16 %v68_v32, %v67_v31 }
 0x13c   :  { %184 = vmatmul.mubr.msk.bf16.vlgmr.msra.gmra.mxu0 %vm23_vm0, %v69_v33 }
 0x1fc   :  { %v130_v35 = vpop.f32.mrf.mxu0 }
 0x1fd   :  { %v131_v36 = vadd.f32 %v163_v34, %v130_v35 }
 0x1fe   :  { %v185_v37 = vpop.f32.mrf.mxu0 }
 0x1ff   :  { %v139_v38 = vmul.f32 0.70710677, %v131_v36  ;;  %v137_v46 = vmul.f32 0.5, %v131_v36 }
 0x200   :  { %v133_v39 = vpop.f32.mrf.mxu0 }
 0x201   :  { %195 = verf.f32 %v139_v38  ;;  %v134_v40 = vadd.f32 %v163_v34, %v133_v39 }
 0x202   :  { %v186_v41 = vpop.f32.mrf.mxu0 }
 0x203   :  { %v140_v42 = vmul.f32 0.70710677, %v134_v40  ;;  %v138_v47 = vmul.f32 0.5, %v134_v40 }
 0x205   :  { %197 = verf.f32 %v140_v42 }
 0x20e   :  { %v196_v43 = vpop.eup %195 }
 0x20f   :  { %v143_v44 = vadd.f32 1.0, %v196_v43 }
 0x211   :  { %v145_v49 = vmul.f32 %v143_v44, %v137_v46 }
 0x212   :  { %v198_v45 = vpop.eup %197 }
 0x213   :  { %v144_v48 = vadd.f32 1.0, %v198_v45 }
 0x215   :  { %v146_v50 = vmul.f32 %v144_v48, %v138_v47 }
 0x217   :  { %v174_v51 = vpack.c.bf16 %v146_v50, %v145_v49 }
 0x219   :  { %175 = vst [vmem:[%s265_s5] sm:$0xff] %v174_v51  }

// kernel: gpt2_forward.15
= control target key start
LH: loop header
LB: loop body
LE: loop exit
PB: predicated region body
PF: predicated region fallthrough
CT: control target
= control target key end

     0   :  { %v199_v0 = vmov 0.0   ;;  %vm200_vm0 = vmmov 0   ;;  %vm142_vm1 = vcmask 261120   ;;  %s268_s1 = inlined_call_operand.vmem [shape: bf16[128,32], index: 1, kind: input, shape index: {}]   ;;  %s269_s0 = inlined_call_operand.vmem [shape: bf16[16,128], index: 0, kind: input, shape index: {}]   ;;  %s270_s2 = inlined_call_operand.vmem [shape: f32[1,32], index: 2, kind: input, shape index: {}]   ;;  %s271_s3 = inlined_call_operand.vmem [shape: f32[16,32], index: 3, kind: input, shape index: {}]   ;;  %s272_s4 = inlined_call_operand.vmem [shape: f32[16,32], index: 4, kind: output, shape index: {}]  }
   0x1   :  { %168 = vmatprep.subr.bf16.mxu0 %v199_v0  ;;  %v190_v1 = vld [vmem:[%s268_s1 + $0x38] sm:$0xff]   ;;  %184 = vmatprep.mubr.msk.bf16.mxu0 %vm200_vm0, %v199_v0  ;;  %v191_v2 = vld [vmem:[%s268_s1 + $0x30] sm:$0xff]   ;;  %v192_v3 = vld [vmem:[%s268_s1 + $0x28] sm:$0xff]  }
   0x2   :  { %169 = vmatpush3.bf16.msra.mxu0 %v190_v1  ;;  %v193_v4 = vld [vmem:[%s268_s1 + $0x20] sm:$0xff]   ;;  %v194_v5 = vld [vmem:[%s268_s1 + $0x18] sm:$0xff]   ;;  %v195_v6 = vld [vmem:[%s268_s1 + $0x10] sm:$0xff]  }
   0x3   :  { %170 = vmatprep.subr.bf16.mxu0 %v199_v0  ;;  %v196_v7 = vld [vmem:[%s268_s1 + $0x8] sm:$0xff]   ;;  %v197_v8 = vld [vmem:[%s268_s1] sm:$0xff]  }
   0x4   :  { %v198_v9 = vld [vmem:[%s269_s0] sm:$0xff]   ;;  %v139_v17 = vld [vmem:[%s271_s3 + $0x8] sm:$0xff] }
   0x5   :  { %v149_v10 = vld [vmem:[%s270_s2] ss:$0 sm:$0xff] }
   0x6   :  { %171 = vmatpush3.bf16.msra.mxu0 %v191_v2  ;;  %v138_v12 = vld [vmem:[%s271_s3] sm:$0xff] }
   0x7   :  { %172 = vmatprep.subr.bf16.mxu0 %v199_v0 }
   0xa   :  { %173 = vmatpush3.bf16.msra.mxu0 %v192_v3 }
   0xb   :  { %174 = vmatprep.subr.bf16.mxu0 %v199_v0 }
   0xe   :  { %175 = vmatpush3.bf16.msra.mxu0 %v193_v4 }
   0xf   :  { %176 = vmatprep.subr.bf16.mxu0 %v199_v0 }
  0x12   :  { %177 = vmatpush3.bf16.msra.mxu0 %v194_v5 }
  0x13   :  { %178 = vmatprep.subr.bf16.mxu0 %v199_v0 }
  0x16   :  { %179 = vmatpush3.bf16.msra.mxu0 %v195_v6 }
  0x17   :  { %180 = vmatprep.subr.bf16.mxu0 %v199_v0 }
  0x1a   :  { %181 = vmatpush3.bf16.msra.mxu0 %v196_v7 }
  0x1b   :  { %182 = vmatprep.subr.bf16.mxu0 %v199_v0 }
  0x1e   :  { %183 = vmatpush3.bf16.msra.mxu0 %v197_v8 }
  0x21   :  { %185 = vmatmul.mubr.bf16.vlgmr.msra.gmra.mxu0 %v198_v9 }
  0xe1   :  { %v131_v11 = vpop.f32.mrf.mxu0 }
  0xe2   :  { %v132_v13 = vadd.f32 %v149_v10, %v131_v11 }
  0xe3   :  { %v186_v14 = vpop.f32.mrf.mxu0 }
  0xe4   :  { %v140_v15 = vadd.f32 %v138_v12, %v132_v13 }
  0xe5   :  { %v134_v16 = vpop.f32.mrf.mxu0 }
  0xe6   :  { %143 = vst.msk [vmem:[%s272_s4] sm:$0xff] %vm142_vm1, %v140_v15  ;;  %v135_v18 = vadd.f32 %v149_v10, %v134_v16 }
  0xe7   :  { %v187_v19 = vpop.f32.mrf.mxu0 }
  0xe8   :  { %v141_v20 = vadd.f32 %v139_v17, %v135_v18 }
  0xea   :  { %144 = vst.msk [vmem:[%s272_s4 + $0x8] sm:$0xff] %vm142_vm1, %v141_v20 }

// kernel: gpt2_forward.21
= control target key start
LH: loop header
LB: loop body
LE: loop exit
PB: predicated region body
PF: predicated region fallthrough
CT: control target
= control target key end

     0   :  { %vm21_vm0 = vcmask 261120   ;;  %s262_s0 = inlined_call_operand.vmem [shape: f32[16,32], index: 0, kind: input, shape index: {}]   ;;  %s263_s1 = inlined_call_operand.vmem [shape: f32[1,32], index: 1, kind: input, shape index: {}]   ;;  %s264_s2 = inlined_call_operand.vmem [shape: f32[1,32], index: 2, kind: input, shape index: {}]   ;;  %s265_s3 = inlined_call_operand.vmem [shape: bf16[32,256], index: 3, kind: input, shape index: {}]   ;;  %s266_s4 = inlined_call_operand.hbm [shape: f32[16,256], index: 4, kind: output, shape index: {}]  }
   0x1   :  { %v19_v0 = vld [vmem:[%s262_s0] sm:$0xff]  ;;  %v20_v1 = vld [vmem:[%s262_s0 + $0x8] sm:$0xff] }
   0x2   :  { %v22_v2 = vsel %vm21_vm0, %v19_v0, 0.0 }
   0x3   :  { %23 = vadd.xlane.f32.xlu0 %v22_v2 }
   0x4   :  { %9 = vsyncpa [#allocation3], 0  ;;  %v25_v3 = vsel %vm21_vm0, %v20_v1, 0.0  ;;  %v169_v14 = vld [vmem:[%s265_s3 + $0x14] ss:$8 sps:$4 sm:$0xff]   ;;  %v201_v17 = vmov 0  }
   0x5   :  { %v171_v15 = vld [vmem:[%s265_s3 + $0x10] ss:$8 sps:$4 sm:$0xff]   ;;  %v172_v16 = vld [vmem:[%s265_s3 + $0x4] ss:$8 sps:$4 sm:$0xff]   ;;  %107 = vmatprep.subr.bf16.mxu0 %v169_v14  ;;  %127 = vmatprep.mubr.bf16.mxu0 %v201_v17  ;;  %v174_v18 = vld [vmem:[%s265_s3] ss:$8 sps:$4 sm:$0xff]  }
   0x6   :  { %108 = vmatpush1.bf16.msra.mxu0 %v171_v15  ;;  %v158_v27 = vld [vmem:[%s263_s1] ss:$0 sm:$0xff]  ;;  %s202_s29 = smov [#allocation2]  }
   0x7   :  { %26 = vadd.xlane.f32.xlu0 %v25_v3  ;;  %109 = vmatprep.subr.bf16.mxu0 %v172_v16  ;;  %v159_v31 = vld [vmem:[%s264_s2] ss:$0 sm:$0xff]  ;;  %s147_s30 = sshll.u32 %s202_s29, 4  ;;  %s148_s30 = int_to_ptr.vmem [resolvable:$true] %s147_s30 }
   0x8   :  { %s179_s1 = scalar_lea.vmem %s148_s30, 512  ;;  %p184_p1 = scmp.lt.s32.totalorder %s148_s30, %s148_s30 }
   0x9   :  { %p180_p0 = scmp.ne.s32.totalorder %s148_s30, %s179_s1  ;;  %p185_p2 = scmp.lt.s32.totalorder %s179_s1, %s179_s1 }
   0xa   :  { %110 = vmatpush1.bf16.msra.mxu0 %v174_v18 }
   0xb   :  { %p186_p3 = por %p185_p2, %p184_p1 }
   0xd   :  { %p187_p4 = pnand %p186_p3, %p180_p0 }
  0x8c   :  { %v24_v4 = vpop.xlane.xlu0 %23 }
  0x8d   :  { %v29_v5 = vmul.f32 0.03125, %v24_v4 }
  0x8f   :  { %v31_v6 = vsub.f32 %v19_v0, %v29_v5 }
  0x90   :  { %v27_v7 = vpop.xlane.xlu0 %26 }
  0x91   :  { %v30_v8 = vmul.f32 0.03125, %v27_v7  ;;  %v33_v9 = vmul.f32 %v31_v6, %v31_v6 }
  0x93   :  { %v32_v10 = vsub.f32 %v20_v1, %v30_v8  ;;  %v35_v11 = vsel %vm21_vm0, %v33_v9, 0.0 }
  0x94   :  { %36 = vadd.xlane.f32.xlu1 %v35_v11 }
  0x95   :  { %v34_v12 = vmul.f32 %v32_v10, %v32_v10 }
  0x97   :  { %v38_v13 = vsel %vm21_vm0, %v34_v12, 0.0 }
  0x98   :  { %39 = vadd.xlane.f32.xlu1 %v38_v13 }
 0x11d   :  { %v37_v19 = vpop.xlane.xlu1 %36 }
 0x11e   :  { %v41_v20 = vmul.f32 0.03125, %v37_v19 }
 0x120   :  { %v43_v21 = vadd.f32 1e-05, %v41_v20 }
 0x121   :  { %v40_v22 = vpop.xlane.xlu1 %39 }
 0x122   :  { %175 = vrsqrt.f32 %v43_v21  ;;  %v42_v23 = vmul.f32 0.03125, %v40_v22 }
 0x124   :  { %v44_v24 = vadd.f32 1e-05, %v42_v23 }
 0x126   :  { %177 = vrsqrt.f32 %v44_v24 }
 0x12f   :  { %v176_v25 = vpop.eup %175 }
 0x130   :  { %v47_v26 = vmul.f32 %v176_v25, %v31_v6 }
 0x132   :  { %v56_v30 = vmul.f32 %v158_v27, %v47_v26 }
 0x133   :  { %v178_v28 = vpop.eup %177 }
 0x134   :  { %v48_v29 = vmul.f32 %v178_v28, %v32_v10  ;;  %v65_v33 = vadd.f32 %v159_v31, %v56_v30 }
 0x136   :  { %v57_v32 = vmul.f32 %v158_v27, %v48_v29 }
 0x138   :  { %v66_v34 = vadd.f32 %v159_v31, %v57_v32 }
 0x13a   :  { %v67_v35 = vpack.c.bf16 %v66_v34, %v65_v33 }
 0x13c   :  { %164 = vmatmul.mubr.msk.bf16.vlgmr.msra.gmra.mxu0 %vm21_vm0, %v67_v35 }
 0x1fc   :  { %v129_v36 = vpop.f32.mrf.mxu0 }
 0x1fd   :  { %138 = vst [vmem:[#allocation2] sm:$0xff] %v129_v36 }
 0x1fe   :  { %v131_v37 = vpop.f32.mrf.mxu0 }
 0x1ff   :  { %139 = vst [vmem:[#allocation2 + $0x8] sm:$0xff] %v131_v37 }
 0x200   :  { %v133_v38 = vpop.f32.mrf.mxu0 }
 0x201   :  { %140 = vst [vmem:[#allocation2 + $0x10] sm:$0xff] %v133_v38 }
 0x202   :  { %v135_v39 = vpop.f32.mrf.mxu0 }
 0x203   :  { %141 = vst [vmem:[#allocation2 + $0x18] sm:$0xff] %v135_v39 }
 0x204   :  { %190 = shalt.err (!%p187_p4)
}
 0x205   :  { %s203_s2 = smov 256   ;;  %s204_s5 = smov 16  }
 0x206   :  { %153 = dma.vmem_to_hbm [thread:$0]  %s148_s30, 512, %s266_s4, [#allocation3], %s203_s2, %s203_s2, %s204_s5  }
 0x207   :  { %199 = dma.done.wait [#allocation3], 512  }
 0x208   :  { %200 = vsyncadd [#allocation3], 4294966784 }
 0x209   :  { %157 = vsyncpa [#allocation3], 1 }

</bundles_post_ra>
